<compile_context>
chip_gen: v7x
topology: tpu7x:2x2x1
jax: 0.10.0
libtpu: 0.0.40
codegen_flags: <defaults>
</compile_context>

<pallas_src>
import functools

import jax
import jax.numpy as jnp
from jax import lax
from jax.experimental import pallas as pl
from jax.experimental.pallas import tpu as pltpu

EPS = 1e-5


def _conv_stats_kernel(x_ref, w_ref, conv_ref, sum_ref, sq_ref, *, H, KH, TN):
    """Conv tile (bf16 MXU, f32 acc) + per-lane sum / sum-of-squares."""
    wp_cin = x_ref.shape[2]
    w_cout = conv_ref.shape[2]

    acc = jnp.zeros((TN * H, w_cout), jnp.float32)
    for kh in range(KH):
        # Slice the shifted window straight off the Ref (vld addressing),
        # then collapse (TN, H) -> TN*H rows of the matmul M dimension.
        xt = x_ref[:, kh:kh + H, :].reshape(TN * H, wp_cin)      # bf16
        acc = acc + jnp.dot(xt, w_ref[kh],
                            preferred_element_type=jnp.float32)

    conv_ref[...] = acc.reshape(TN, H, w_cout)
    # Per-lane (W*Cout) partial batch statistics for this sample tile.
    sum_ref[0] = jnp.sum(acc, axis=0, keepdims=True)
    sq_ref[0] = jnp.sum(acc * acc, axis=0, keepdims=True)


def _bn_relu_kernel(conv_ref, scale_ref, shift_ref, o_ref):
    """y = relu(conv * scale + shift); scale/shift are (1, W*Cout) lanes."""
    o_ref[...] = jnp.maximum(
        conv_ref[...] * scale_ref[...] + shift_ref[...], 0.0)


def _pick_tn(n, h, w_cout):
    # Largest divisor of n with M = tn*h <= 256 (fills v6e/v7x MXU rows)
    # and an f32 conv tile <= ~1 MiB (spill-safe, double-buffer friendly).
    best = 1
    for tn in range(1, n + 1):
        if n % tn:
            continue
        if tn * h <= 256 and tn * h * w_cout * 4 <= (1 << 20):
            best = tn
    return best


def convblock_forward(x_nchw, w_oihw, b, gamma, beta, *, eps=EPS):
    del b  # conv bias cancels exactly under training-mode BatchNorm
    N, Cin, H, W = x_nchw.shape
    Cout, _, KH, KW = w_oihw.shape
    PAD = 1
    Hp, Wp = H + 2 * PAD, W + 2 * PAD
    WpCin = Wp * Cin
    WCout = W * Cout

    TN = _pick_tn(N, H, WCout)
    GN = N // TN

    # ---- layout plumbing (XLA): NCHW -> NHWC -> pad -> (N, Hp, Wp*Cin) -----
    xh = jnp.transpose(x_nchw, (0, 2, 3, 1))
    xp = jnp.pad(xh, ((0, 0), (PAD, PAD), (PAD, PAD), (0, 0)))
    x3 = xp.reshape(N, Hp, WpCin).astype(jnp.bfloat16)

    # ---- one-time weight transform: block-Toeplitz (KH, Wp*Cin, W*Cout) ----
    # wbig[kh, (w+kw)*Cin + ci, w*Cout + co] = w[co, ci, kh, kw]
    w_hwio = jnp.transpose(w_oihw, (2, 3, 1, 0)).astype(jnp.float32)
    wbig = jnp.stack([
        sum(jnp.kron(jnp.eye(Wp, W, k=-kw, dtype=jnp.float32), w_hwio[kh, kw])
            for kw in range(KW))
        for kh in range(KH)]).astype(jnp.bfloat16)       # (KH, Wp*Cin, W*Cout)

    # ------------------------ pass 1: conv + stats --------------------------
    conv_kernel = functools.partial(_conv_stats_kernel, H=H, KH=KH, TN=TN)
    conv_cost = pl.CostEstimate(
        flops=2 * KH * N * H * WpCin * WCout,
        transcendentals=0,
        bytes_accessed=(2 * x3.size + 2 * wbig.size
                        + 4 * N * H * WCout + 2 * 4 * GN * WCout))

    conv, lane_sum, lane_sq = pl.pallas_call(
        conv_kernel,
        out_shape=(jax.ShapeDtypeStruct((N, H, WCout), jnp.float32),
                   jax.ShapeDtypeStruct((GN, 1, WCout), jnp.float32),
                   jax.ShapeDtypeStruct((GN, 1, WCout), jnp.float32)),
        grid_spec=pltpu.PrefetchScalarGridSpec(
            num_scalar_prefetch=0,
            grid=(GN,),
            in_specs=[
                pl.BlockSpec((TN, Hp, WpCin), lambda n: (n, 0, 0)),   # x tile
                pl.BlockSpec((KH, WpCin, WCout), lambda n: (0, 0, 0)),  # wbig
            ],
            out_specs=(
                pl.BlockSpec((TN, H, WCout), lambda n: (n, 0, 0)),    # conv
                pl.BlockSpec((1, 1, WCout), lambda n: (n, 0, 0)),     # sum
                pl.BlockSpec((1, 1, WCout), lambda n: (n, 0, 0)),     # sumsq
            )),
        compiler_params=pltpu.CompilerParams(
            dimension_semantics=("parallel",),
            vmem_limit_bytes=32 * 1024 * 1024),
        cost_estimate=conv_cost,
    )(x3, wbig)

    # ---- tiny XLA finalize: exact batch stats -> per-lane scale/shift ------
    count = float(N * H * W)
    ch_sum = jnp.sum(lane_sum, axis=(0, 1)).reshape(W, Cout).sum(axis=0)
    ch_sq = jnp.sum(lane_sq, axis=(0, 1)).reshape(W, Cout).sum(axis=0)
    mean = ch_sum / count
    # NOTE: E[x^2]-E[x]^2 in f32; fine while |mean| ~ std. Switch to a
    # shifted / two-pass accumulation if activations get large offsets.
    var = ch_sq / count - mean * mean
    scale_c = gamma.astype(jnp.float32) * lax.rsqrt(var + eps)
    shift_c = beta.astype(jnp.float32) - mean * scale_c
    scale_l = jnp.tile(scale_c, W).reshape(1, WCout)
    shift_l = jnp.tile(shift_c, W).reshape(1, WCout)

    # ---------------------- pass 2: BN + ReLU (in place) --------------------
    bn_cost = pl.CostEstimate(
        flops=3 * N * H * WCout,
        transcendentals=0,
        bytes_accessed=2 * 4 * N * H * WCout + 2 * 4 * WCout)

    out = pl.pallas_call(
        _bn_relu_kernel,
        out_shape=jax.ShapeDtypeStruct((N, H, WCout), jnp.float32),
        grid_spec=pltpu.PrefetchScalarGridSpec(
            num_scalar_prefetch=0,
            grid=(GN,),
            in_specs=[
                pl.BlockSpec((TN, H, WCout), lambda n: (n, 0, 0)),    # conv
                pl.BlockSpec((1, WCout), lambda n: (0, 0)),           # scale
                pl.BlockSpec((1, WCout), lambda n: (0, 0)),           # shift
            ],
            out_specs=pl.BlockSpec((TN, H, WCout), lambda n: (n, 0, 0))),
        compiler_params=pltpu.CompilerParams(
            dimension_semantics=("parallel",),
            vmem_limit_bytes=32 * 1024 * 1024),
        cost_estimate=bn_cost,
        input_output_aliases={0: 0},    # write BN+ReLU in place over conv
    )(conv, scale_l, shift_l)

    # (N, H, W*Cout) -> (N, H, W, Cout) -> NCHW
    return jnp.transpose(out.reshape(N, H, W, Cout), (0, 3, 1, 2))


def convblock_reference(x, w, b, gamma, beta, eps=EPS):
    """Pure-JAX reference mirroring the PyTorch forward (training-mode BN)."""
    dn = ('NCHW', 'OIHW', 'NCHW')
    y = lax.conv_general_dilated(x, w, (1, 1), ((1, 1), (1, 1)),
                                 dimension_numbers=dn)
    y = y + b[None, :, None, None]
    m = y.mean(axis=(0, 2, 3), keepdims=True)
    v = ((y - m) ** 2).mean(axis=(0, 2, 3), keepdims=True)
    y = (y - m) * lax.rsqrt(v + eps) * gamma[None, :, None, None] \
        + beta[None, :, None, None]
    return jnp.maximum(y, 0.0)   # pool=False -> identity pool


if __name__ == "__main__":
    key = jax.random.PRNGKey(0)
    N, Cin, Cout, H, W = 2, 4, 8, 16, 16

    k = jax.random.split(key, 5)
    x = jax.random.normal(k[0], (N, Cin, H, W), jnp.float32)
    w = 0.1 * jax.random.normal(k[1], (Cout, Cin, 3, 3), jnp.float32)   # conv1
    b = 0.1 * jax.random.normal(k[2], (Cout,), jnp.float32)
    gamma = 1.0 + 0.1 * jax.random.normal(k[3], (Cout,), jnp.float32)   # bn1.weight
    beta = 0.1 * jax.random.normal(k[4], (Cout,), jnp.float32)          # bn1.bias

    fwd = jax.jit(convblock_forward)
    out = jax.block_until_ready(fwd(x, w, b, gamma, beta))
    ref = convblock_reference(x, w, b, gamma, beta)

    assert out.shape == (N, Cout, H, W)
    max_err = float(jnp.max(jnp.abs(out - ref)))
    # bf16 MXU operands (f32 accumulation) vs. the all-f32 reference:
    # tolerance relaxed accordingly (outputs are O(1) after BN).
    assert jnp.allclose(out, ref, atol=5e-2, rtol=5e-2), max_err

    print("KERNEL_OK")
</pallas_src>

<mosaic_0001>
module attributes {stable_mosaic.version = 11 : i64} {
  func.func @_conv_stats_kernel(%arg0: i32, %arg1: memref<2x18x72xbf16, #tpu.memory_space<vmem>>, %arg2: memref<3x72x128xbf16, #tpu.memory_space<vmem>>, %arg3: memref<2x16x128xf32, #tpu.memory_space<vmem>>, %arg4: memref<1x1x128xf32, #tpu.memory_space<vmem>>, %arg5: memref<1x1x128xf32, #tpu.memory_space<vmem>>) attributes {dimension_semantics = [#tpu.dimension_semantics<parallel>], iteration_bounds = array<i64: 1>, scalar_prefetch = 0 : i64, scratch_operands = 0 : i64, tpu.core_type = #tpu.core_type<tc>, window_params = [{transform_indices = @transform_0, window_bounds = array<i64: 2, 18, 72>}, {pipeline_mode = #tpu.pipeline_mode<synchronous>, transform_indices = @transform_1, window_bounds = array<i64: 3, 72, 128>}, {transform_indices = @transform_2, window_bounds = array<i64: 2, 16, 128>}, {transform_indices = @transform_3, window_bounds = array<i64: 1, 1, 128>}, {transform_indices = @transform_4, window_bounds = array<i64: 1, 1, 128>}]} {
    %cst = arith.constant 0.000000e+00 : f32
    %0 = vector.broadcast %cst : f32 to vector<32x128xf32>
    %c0 = arith.constant 0 : index
    %c0_0 = arith.constant 0 : index
    %c0_1 = arith.constant 0 : index
    %1 = vector.load %arg1[%c0, %c0_0, %c0_1] : memref<2x18x72xbf16, #tpu.memory_space<vmem>>, vector<2x16x72xbf16>
    %2 = vector.shape_cast %1 : vector<2x16x72xbf16> to vector<32x72xbf16>
    %c0_2 = arith.constant 0 : index
    %c0_3 = arith.constant 0 : index
    %c0_4 = arith.constant 0 : index
    %3 = vector.load %arg2[%c0_2, %c0_3, %c0_4] : memref<3x72x128xbf16, #tpu.memory_space<vmem>>, vector<1x72x128xbf16>
    %4 = vector.shape_cast %3 : vector<1x72x128xbf16> to vector<72x128xbf16>
    %cst_5 = arith.constant dense<0.000000e+00> : vector<32x128xf32>
    %5 = tpu.matmul %2, %4, %cst_5 {dimension_numbers = #tpu.dot_dimension_numbers<[1], [0], [0], [1], [0, 0, 1, 1], [], []>} : vector<32x72xbf16>, vector<72x128xbf16>, vector<32x128xf32> -> vector<32x128xf32>
    %6 = arith.addf %0, %5 : vector<32x128xf32>
    %c0_6 = arith.constant 0 : index
    %c1 = arith.constant 1 : index
    %c0_7 = arith.constant 0 : index
    %7 = vector.load %arg1[%c0_6, %c1, %c0_7] : memref<2x18x72xbf16, #tpu.memory_space<vmem>>, vector<2x16x72xbf16>
    %8 = vector.shape_cast %7 : vector<2x16x72xbf16> to vector<32x72xbf16>
    %c1_8 = arith.constant 1 : index
    %c0_9 = arith.constant 0 : index
    %c0_10 = arith.constant 0 : index
    %9 = vector.load %arg2[%c1_8, %c0_9, %c0_10] : memref<3x72x128xbf16, #tpu.memory_space<vmem>>, vector<1x72x128xbf16>
    %10 = vector.shape_cast %9 : vector<1x72x128xbf16> to vector<72x128xbf16>
    %cst_11 = arith.constant dense<0.000000e+00> : vector<32x128xf32>
    %11 = tpu.matmul %8, %10, %cst_11 {dimension_numbers = #tpu.dot_dimension_numbers<[1], [0], [0], [1], [0, 0, 1, 1], [], []>} : vector<32x72xbf16>, vector<72x128xbf16>, vector<32x128xf32> -> vector<32x128xf32>
    %12 = arith.addf %6, %11 : vector<32x128xf32>
    %c0_12 = arith.constant 0 : index
    %c2 = arith.constant 2 : index
    %c0_13 = arith.constant 0 : index
    %13 = vector.load %arg1[%c0_12, %c2, %c0_13] : memref<2x18x72xbf16, #tpu.memory_space<vmem>>, vector<2x16x72xbf16>
    %14 = vector.shape_cast %13 : vector<2x16x72xbf16> to vector<32x72xbf16>
    %c2_14 = arith.constant 2 : index
    %c0_15 = arith.constant 0 : index
    %c0_16 = arith.constant 0 : index
    %15 = vector.load %arg2[%c2_14, %c0_15, %c0_16] : memref<3x72x128xbf16, #tpu.memory_space<vmem>>, vector<1x72x128xbf16>
    %16 = vector.shape_cast %15 : vector<1x72x128xbf16> to vector<72x128xbf16>
    %cst_17 = arith.constant dense<0.000000e+00> : vector<32x128xf32>
    %17 = tpu.matmul %14, %16, %cst_17 {dimension_numbers = #tpu.dot_dimension_numbers<[1], [0], [0], [1], [0, 0, 1, 1], [], []>} : vector<32x72xbf16>, vector<72x128xbf16>, vector<32x128xf32> -> vector<32x128xf32>
    %18 = arith.addf %12, %17 : vector<32x128xf32>
    %19 = vector.shape_cast %18 : vector<32x128xf32> to vector<2x16x128xf32>
    %c0_18 = arith.constant 0 : index
    %c0_19 = arith.constant 0 : index
    %c0_20 = arith.constant 0 : index
    %20 = vector.load %arg3[%c0_18, %c0_19, %c0_20] : memref<2x16x128xf32, #tpu.memory_space<vmem>>, vector<2x16x128xf32>
    tpu.vector_store %arg3[%c0_18, %c0_19, %c0_20], %19 {strides = array<i32>} : memref<2x16x128xf32, #tpu.memory_space<vmem>>, vector<2x16x128xf32>,
    %cst_21 = arith.constant dense<0.000000e+00> : vector<128xf32>
    %21 = vector.multi_reduction <add>, %18, %cst_21 [0] : vector<32x128xf32> to vector<128xf32>
    %22 = vector.shape_cast %21 : vector<128xf32> to vector<1x128xf32>
    %c0_22 = arith.constant 0 : index
    %c0_23 = arith.constant 0 : index
    %c0_24 = arith.constant 0 : index
    %23 = vector.load %arg4[%c0_22, %c0_23, %c0_24] : memref<1x1x128xf32, #tpu.memory_space<vmem>>, vector<1x1x128xf32>
    %24 = vector.shape_cast %23 : vector<1x1x128xf32> to vector<1x128xf32>
    %25 = vector.shape_cast %22 : vector<1x128xf32> to vector<1x1x128xf32>
    tpu.vector_store %arg4[%c0_22, %c0_23, %c0_24], %25 {strides = array<i32>} : memref<1x1x128xf32, #tpu.memory_space<vmem>>, vector<1x1x128xf32>,
    %26 = arith.mulf %18, %18 : vector<32x128xf32>
    %cst_25 = arith.constant dense<0.000000e+00> : vector<128xf32>
    %27 = vector.multi_reduction <add>, %26, %cst_25 [0] : vector<32x128xf32> to vector<128xf32>
    %28 = vector.shape_cast %27 : vector<128xf32> to vector<1x128xf32>
    %c0_26 = arith.constant 0 : index
    %c0_27 = arith.constant 0 : index
    %c0_28 = arith.constant 0 : index
    %29 = vector.load %arg5[%c0_26, %c0_27, %c0_28] : memref<1x1x128xf32, #tpu.memory_space<vmem>>, vector<1x1x128xf32>
    %30 = vector.shape_cast %29 : vector<1x1x128xf32> to vector<1x128xf32>
    %31 = vector.shape_cast %28 : vector<1x128xf32> to vector<1x1x128xf32>
    tpu.vector_store %arg5[%c0_26, %c0_27, %c0_28], %31 {strides = array<i32>} : memref<1x1x128xf32, #tpu.memory_space<vmem>>, vector<1x1x128xf32>,
    return
  }
  func.func @transform_0(%arg0: i32) -> (i32, i32, i32) {
    %c0_i32 = arith.constant 0 : i32
    %c0_i32_0 = arith.constant 0 : i32
    %c0_i32_1 = arith.constant 0 : i32
    return %arg0, %c0_i32, %c0_i32_0 : i32, i32, i32
  }
  func.func @transform_1(%arg0: i32) -> (i32, i32, i32) {
    %c0_i32 = arith.constant 0 : i32
    %c0_i32_0 = arith.constant 0 : i32
    %c0_i32_1 = arith.constant 0 : i32
    %c0_i32_2 = arith.constant 0 : i32
    return %c0_i32, %c0_i32_0, %c0_i32_1 : i32, i32, i32
  }
  func.func @transform_2(%arg0: i32) -> (i32, i32, i32) {
    %c0_i32 = arith.constant 0 : i32
    %c0_i32_0 = arith.constant 0 : i32
    %c0_i32_1 = arith.constant 0 : i32
    return %arg0, %c0_i32, %c0_i32_0 : i32, i32, i32
  }
  func.func @transform_3(%arg0: i32) -> (i32, i32, i32) {
    %c0_i32 = arith.constant 0 : i32
    %c0_i32_0 = arith.constant 0 : i32
    %c0_i32_1 = arith.constant 0 : i32
    return %arg0, %c0_i32, %c0_i32_0 : i32, i32, i32
  }
  func.func @transform_4(%arg0: i32) -> (i32, i32, i32) {
    %c0_i32 = arith.constant 0 : i32
    %c0_i32_0 = arith.constant 0 : i32
    %c0_i32_1 = arith.constant 0 : i32
    return %arg0, %c0_i32, %c0_i32_0 : i32, i32, i32
  }
}

module attributes {stable_mosaic.version = 11 : i64} {
  func.func @_bn_relu_kernel(%arg0: i32, %arg1: memref<2x16x128xf32, #tpu.memory_space<vmem>>, %arg2: memref<1x128xf32, #tpu.memory_space<vmem>>, %arg3: memref<1x128xf32, #tpu.memory_space<vmem>>, %arg4: memref<2x16x128xf32, #tpu.memory_space<vmem>>) attributes {dimension_semantics = [#tpu.dimension_semantics<parallel>], iteration_bounds = array<i64: 1>, scalar_prefetch = 0 : i64, scratch_operands = 0 : i64, tpu.core_type = #tpu.core_type<tc>, window_params = [{transform_indices = @transform_0, window_bounds = array<i64: 2, 16, 128>}, {pipeline_mode = #tpu.pipeline_mode<synchronous>, transform_indices = @transform_1, window_bounds = array<i64: 1, 128>}, {pipeline_mode = #tpu.pipeline_mode<synchronous>, transform_indices = @transform_2, window_bounds = array<i64: 1, 128>}, {transform_indices = @transform_3, window_bounds = array<i64: 2, 16, 128>}]} {
    %c0 = arith.constant 0 : index
    %c0_0 = arith.constant 0 : index
    %c0_1 = arith.constant 0 : index
    %0 = vector.load %arg1[%c0, %c0_0, %c0_1] : memref<2x16x128xf32, #tpu.memory_space<vmem>>, vector<2x16x128xf32>
    %c0_2 = arith.constant 0 : index
    %c0_3 = arith.constant 0 : index
    %1 = vector.load %arg2[%c0_2, %c0_3] : memref<1x128xf32, #tpu.memory_space<vmem>>, vector<1x128xf32>
    %2 = vector.shape_cast %1 : vector<1x128xf32> to vector<1x1x128xf32>
    %3 = vector.broadcast %2 : vector<1x1x128xf32> to vector<2x16x128xf32>
    %4 = arith.mulf %0, %3 : vector<2x16x128xf32>
    %c0_4 = arith.constant 0 : index
    %c0_5 = arith.constant 0 : index
    %5 = vector.load %arg3[%c0_4, %c0_5] : memref<1x128xf32, #tpu.memory_space<vmem>>, vector<1x128xf32>
    %6 = vector.shape_cast %5 : vector<1x128xf32> to vector<1x1x128xf32>
    %7 = vector.broadcast %6 : vector<1x1x128xf32> to vector<2x16x128xf32>
    %8 = arith.addf %4, %7 : vector<2x16x128xf32>
    %cst = arith.constant 0.000000e+00 : f32
    %9 = vector.broadcast %cst : f32 to vector<2x16x128xf32>
    %10 = arith.maximumf %8, %9 : vector<2x16x128xf32>
    %c0_6 = arith.constant 0 : index
    %c0_7 = arith.constant 0 : index
    %c0_8 = arith.constant 0 : index
    %11 = vector.load %arg4[%c0_6, %c0_7, %c0_8] : memref<2x16x128xf32, #tpu.memory_space<vmem>>, vector<2x16x128xf32>
    tpu.vector_store %arg4[%c0_6, %c0_7, %c0_8], %10 {strides = array<i32>} : memref<2x16x128xf32, #tpu.memory_space<vmem>>, vector<2x16x128xf32>,
    return
  }
  func.func @transform_0(%arg0: i32) -> (i32, i32, i32) {
    %c0_i32 = arith.constant 0 : i32
    %c0_i32_0 = arith.constant 0 : i32
    %c0_i32_1 = arith.constant 0 : i32
    return %arg0, %c0_i32, %c0_i32_0 : i32, i32, i32
  }
  func.func @transform_1(%arg0: i32) -> (i32, i32) {
    %c0_i32 = arith.constant 0 : i32
    %c0_i32_0 = arith.constant 0 : i32
    %c0_i32_1 = arith.constant 0 : i32
    return %c0_i32, %c0_i32_0 : i32, i32
  }
  func.func @transform_2(%arg0: i32) -> (i32, i32) {
    %c0_i32 = arith.constant 0 : i32
    %c0_i32_0 = arith.constant 0 : i32
    %c0_i32_1 = arith.constant 0 : i32
    return %c0_i32, %c0_i32_0 : i32, i32
  }
  func.func @transform_3(%arg0: i32) -> (i32, i32, i32) {
    %c0_i32 = arith.constant 0 : i32
    %c0_i32_0 = arith.constant 0 : i32
    %c0_i32_1 = arith.constant 0 : i32
    return %arg0, %c0_i32, %c0_i32_0 : i32, i32, i32
  }
}

</mosaic_0001>

<bundles_post_ra>
// kernel: tile.13
= control target key start
LH: loop header
LB: loop body
LE: loop exit
PB: predicated region body
PF: predicated region fallthrough
CT: control target
= control target key end

     0   :  { %s28_s0 = inlined_call_operand.vmem [shape: f32[8], index: 0, kind: input, shape index: {}]   ;;  %s29_s1 = inlined_call_operand.vmem [shape: f32[16,8], index: 1, kind: output, shape index: {}]  }
   0x1   :  { %v4_v0 = vld [vmem:[%s28_s0] ss:$0 sm:$0xff] }
   0x2   :  { %5 = vst [vmem:[%s29_s1] sm:$0xff] %v4_v0  ;;  %8 = vst [vmem:[%s29_s1 + $0x8] sm:$0xff] %v4_v0 }

// kernel: tile.14
= control target key start
LH: loop header
LB: loop body
LE: loop exit
PB: predicated region body
PF: predicated region fallthrough
CT: control target
= control target key end

     0   :  { %s131_s10 = smov 120   ;;  %s132_s11 = smov 104   ;;  %vm3_vm0 = vcmask 64512   ;;  %vm9_vm1 = vcmask 1048512   ;;  %vm15_vm2 = vcmask 982912   ;;  %vm21_vm3 = vcmask 917312   ;;  %s207_s0 = inlined_call_operand.vmem [shape: f32[16,8], index: 0, kind: input, shape index: {}]   ;;  %s208_s1 = inlined_call_operand.vmem [shape: f32[1,128], index: 1, kind: output, shape index: {}]  }
   0x1   :  { %v101_v0 = vld [vmem:[%s207_s0 + $0xf] sm:$0x1]   ;;  %v103_v1 = vld [vmem:[%s207_s0 + $0xd] sm:$0x1]   ;;  %v102_v2 = vld [vmem:[%s207_s0 + $0xe] sm:$0x1]  }
   0x2   :  { %7 = vrot.lane.b32.xlu0 %v101_v0, %s131_s10  ;;  %19 = vrot.lane.b32.xlu1 %v103_v1, %s132_s11  ;;  %v104_v3 = vld [vmem:[%s207_s0 + $0xc] sm:$0x1]   ;;  %s133_s16 = smov 112   ;;  %s134_s17 = smov 96   ;;  %v105_v4 = vld [vmem:[%s207_s0 + $0xb] sm:$0x1]  }
   0x3   :  { %v106_v5 = vld [vmem:[%s207_s0 + $0xa] sm:$0x1]   ;;  %v2_v6 = vld [vmem:[%s207_s0] sm:$0x1]   ;;  %s135_s24 = smov 88   ;;  %s136_s25 = smov 80  }
   0x4   :  { %4 = vst.msk [vmem:[#allocation0] sm:$0x1] %vm3_vm0, %v2_v6   ;;  %v107_v7 = vld [vmem:[%s207_s0 + $0x9] sm:$0x1]   ;;  %v108_v8 = vld [vmem:[%s207_s0 + $0x8] sm:$0x1]  }
   0x5   :  { %s137_s30 = smov 72   ;;  %s138_s2 = smov 64   ;;  %v109_v9 = vld [vmem:[%s207_s0 + $0x7] sm:$0x1]   ;;  %v110_v10 = vld [vmem:[%s207_s0 + $0x6] sm:$0x1]  }
   0x6   :  { %13 = vrot.lane.b32.xlu0 %v102_v2, %s133_s16  ;;  %25 = vrot.lane.b32.xlu1 %v104_v3, %s134_s17  ;;  %s139_s7 = smov 56   ;;  %s140_s8 = smov 48   ;;  %v111_v11 = vld [vmem:[%s207_s0 + $0x5] sm:$0x1]   ;;  %v112_v12 = vld [vmem:[%s207_s0 + $0x4] sm:$0x1]  }
   0x7   :  { %s141_s13 = smov 40   ;;  %s142_s14 = smov 32   ;;  %v113_v13 = vld [vmem:[%s207_s0 + $0x3] sm:$0x1]   ;;  %v114_v14 = vld [vmem:[%s207_s0 + $0x2] sm:$0x1]  }
   0x8   :  { %s143_s19 = smov 24   ;;  %s144_s20 = smov 16   ;;  %v115_v15 = vld [vmem:[%s207_s0 + $0x1] sm:$0x1]   ;;  %vm27_vm4 = vcmask 851712   ;;  %vm33_vm5 = vcmask 786112  }
   0x9   :  { %s145_s0 = smov 8   ;;  %vm39_vm6 = vcmask 720512   ;;  %vm45_vm7 = vcmask 654912   ;;  %vm51_vm8 = vcmask 589312   ;;  %vm57_vm9 = vcmask 523712  }
   0xa   :  { %31 = vrot.lane.b32.xlu0 %v105_v4, %s135_s24  ;;  %37 = vrot.lane.b32.xlu1 %v106_v5, %s136_s25  ;;  %vm63_vm10 = vcmask 458112   ;;  %vm69_vm11 = vcmask 392512   ;;  %vm75_vm12 = vcmask 326912   ;;  %vm81_vm13 = vcmask 261312  }
   0xb   :  { %vm87_vm14 = vcmask 195712   ;;  %vm93_vm15 = vcmask 130112  }
   0xe   :  { %43 = vrot.lane.b32.xlu0 %v107_v7, %s137_s30  ;;  %49 = vrot.lane.b32.xlu1 %v108_v8, %s138_s2 }
  0x12   :  { %55 = vrot.lane.b32.xlu0 %v109_v9, %s139_s7  ;;  %61 = vrot.lane.b32.xlu1 %v110_v10, %s140_s8 }
  0x16   :  { %67 = vrot.lane.b32.xlu0 %v111_v11, %s141_s13  ;;  %73 = vrot.lane.b32.xlu1 %v112_v12, %s142_s14 }
  0x1a   :  { %79 = vrot.lane.b32.xlu0 %v113_v13, %s143_s19  ;;  %85 = vrot.lane.b32.xlu1 %v114_v14, %s144_s20 }
  0x1e   :  { %91 = vrot.lane.b32.xlu0 %v115_v15, %s145_s0 }
  0x74   :  { %v8_v16 = vpop.permute.xlu0 %7   ;;  %v20_v17 = vpop.permute.xlu1 %19  }
  0x75   :  { %10 = vst.msk [vmem:[#allocation0] sm:$0x1] %vm9_vm1, %v8_v16  }
  0x78   :  { %v14_v18 = vpop.permute.xlu0 %13   ;;  %v26_v19 = vpop.permute.xlu1 %25  }
  0x79   :  { %16 = vst.msk [vmem:[#allocation0] sm:$0x1] %vm15_vm2, %v14_v18  }
  0x7a   :  { %22 = vst.msk [vmem:[#allocation0] sm:$0x1] %vm21_vm3, %v20_v17  }
  0x7b   :  { %28 = vst.msk [vmem:[#allocation0] sm:$0x1] %vm27_vm4, %v26_v19  }
  0x7c   :  { %v32_v20 = vpop.permute.xlu0 %31   ;;  %v38_v21 = vpop.permute.xlu1 %37  }
  0x7d   :  { %34 = vst.msk [vmem:[#allocation0] sm:$0x1] %vm33_vm5, %v32_v20  }
  0x7e   :  { %40 = vst.msk [vmem:[#allocation0] sm:$0x1] %vm39_vm6, %v38_v21  }
  0x80   :  { %v44_v22 = vpop.permute.xlu0 %43   ;;  %v50_v23 = vpop.permute.xlu1 %49  }
  0x81   :  { %46 = vst.msk [vmem:[#allocation0] sm:$0x1] %vm45_vm7, %v44_v22  }
  0x82   :  { %52 = vst.msk [vmem:[#allocation0] sm:$0x1] %vm51_vm8, %v50_v23  }
  0x84   :  { %v56_v24 = vpop.permute.xlu0 %55   ;;  %v62_v25 = vpop.permute.xlu1 %61  }
  0x85   :  { %58 = vst.msk [vmem:[#allocation0] sm:$0x1] %vm57_vm9, %v56_v24  }
  0x86   :  { %64 = vst.msk [vmem:[#allocation0] sm:$0x1] %vm63_vm10, %v62_v25  }
  0x88   :  { %v68_v26 = vpop.permute.xlu0 %67   ;;  %v74_v27 = vpop.permute.xlu1 %73  }
  0x89   :  { %70 = vst.msk [vmem:[#allocation0] sm:$0x1] %vm69_vm11, %v68_v26  }
  0x8a   :  { %76 = vst.msk [vmem:[#allocation0] sm:$0x1] %vm75_vm12, %v74_v27  }
  0x8c   :  { %v80_v28 = vpop.permute.xlu0 %79   ;;  %v86_v29 = vpop.permute.xlu1 %85  }
  0x8d   :  { %82 = vst.msk [vmem:[#allocation0] sm:$0x1] %vm81_vm13, %v80_v28  }
  0x8e   :  { %88 = vst.msk [vmem:[#allocation0] sm:$0x1] %vm87_vm14, %v86_v29  }
  0x90   :  { %v92_v30 = vpop.permute.xlu0 %91  }
  0x91   :  { %94 = vst.msk [vmem:[#allocation0] sm:$0x1] %vm93_vm15, %v92_v30  }
  0x98   :  { %v98_v31 = vld [vmem:[#allocation0] sm:$0x1] }
  0x99   :  { %100 = vst [vmem:[%s208_s1] sm:$0x1] %v98_v31 }

// kernel: convblock_forward.3
= control target key start
LH: loop header
LB: loop body
LE: loop exit
PB: predicated region body
PF: predicated region fallthrough
CT: control target
= control target key end

     0   :  { %s104_s0 = inlined_call_operand.vmem [shape: f32[2,16,128], index: 0, kind: input, shape index: {}, may-alias: {0,3}]   ;;  %s105_s1 = inlined_call_operand.vmem [shape: f32[1,128], index: 1, kind: input, shape index: {}]   ;;  %s106_s2 = inlined_call_operand.vmem [shape: f32[1,128], index: 2, kind: input, shape index: {}]   ;;  %s107_s3 = inlined_call_operand.vmem [shape: f32[2,16,128], index: 3, kind: output, shape index: {}, may-alias: {0,3}]  }
   0x1   :  { %v14_v0 = vld [vmem:[%s104_s0] sm:$0xff]  ;;  %v15_v4 = vld [vmem:[%s104_s0 + $0x8] sm:$0xff]  ;;  %v16_v5 = vld [vmem:[%s104_s0 + $0x10] sm:$0xff] }
   0x2   :  { %v52_v1 = vld [vmem:[%s105_s1] ss:$0 sm:$0xff]  ;;  %v17_v6 = vld [vmem:[%s104_s0 + $0x18] sm:$0xff] }
   0x3   :  { %v53_v2 = vld [vmem:[%s106_s2] ss:$0 sm:$0xff]  ;;  %v25_v3 = vmul.f32 %v52_v1, %v14_v0  ;;  %v26_v7 = vmul.f32 %v52_v1, %v15_v4  ;;  %v27_v8 = vmul.f32 %v52_v1, %v16_v5  ;;  %v28_v9 = vmul.f32 %v52_v1, %v17_v6 }
   0x5   :  { %v36_v10 = vadd.f32 %v53_v2, %v25_v3  ;;  %v37_v11 = vadd.f32 %v53_v2, %v26_v7  ;;  %v38_v12 = vadd.f32 %v53_v2, %v27_v8  ;;  %v39_v13 = vadd.f32 %v53_v2, %v28_v9 }
   0x7   :  { %v40_v14 = vmax.f32 %v36_v10, 0.0  ;;  %v41_v15 = vmax.f32 %v37_v11, 0.0  ;;  %v42_v16 = vmax.f32 %v38_v12, 0.0  ;;  %v43_v17 = vmax.f32 %v39_v13, 0.0 }
   0x9   :  { %44 = vst [vmem:[%s107_s3] sm:$0xff] %v40_v14  ;;  %45 = vst [vmem:[%s107_s3 + $0x8] sm:$0xff] %v41_v15 }
   0xa   :  { %46 = vst [vmem:[%s107_s3 + $0x10] sm:$0xff] %v42_v16  ;;  %47 = vst [vmem:[%s107_s3 + $0x18] sm:$0xff] %v43_v17 }

// kernel: convblock_forward.2
= control target key start
LH: loop header
LB: loop body
LE: loop exit
PB: predicated region body
PF: predicated region fallthrough
CT: control target
= control target key end

     0   :  { %vm124_vm0 = vcmask 588800   ;;  %vm30_vm1 = vsmask.f32 3328  ;;  %vm31_vm2 = vsmask.f32 7440  ;;  %vm131_vm3 = vcmask 1043456   ;;  %s749_s1 = inlined_call_operand.vmem [shape: bf16[3,72,128], index: 1, kind: input, shape index: {}]   ;;  %s750_s0 = inlined_call_operand.vmem [shape: bf16[2,18,72], index: 0, kind: input, shape index: {}]   ;;  %s751_s2 = inlined_call_operand.vmem [shape: f32[2,16,128], index: 2, kind: output, shape index: {0}]   ;;  %s752_s3 = inlined_call_operand.vmem [shape: f32[1,1,128], index: 3, kind: output, shape index: {1}]   ;;  %s753_s4 = inlined_call_operand.vmem [shape: f32[1,1,128], index: 4, kind: output, shape index: {2}]  }
   0x1   :  { %v568_v0 = vld [vmem:[%s749_s1] sm:$0xff]   ;;  %v569_v1 = vld [vmem:[%s749_s1 + $0x8] sm:$0xff]   ;;  %v570_v2 = vld [vmem:[%s749_s1 + $0x10] sm:$0xff]   ;;  %vm285_vm4 = vcmask 1042432   ;;  %vm286_vm5 = vcmask 1046532  }
   0x2   :  { %529 = vmatprep.subr.bf16.mxu0 %v568_v0  ;;  %v573_v3 = vld [vmem:[%s749_s1 + $0x24] sm:$0xff]   ;;  %v15_v4 = vld [vmem:[%s750_s0] sm:$0xf]  ;;  %v571_v9 = vld [vmem:[%s749_s1 + $0x18] sm:$0xff]  }
   0x3   :  { %530 = vmatpush3.bf16.msra.mxu0 %v568_v0  ;;  %v572_v5 = vld [vmem:[%s749_s1 + $0x20] ss:$0 sps:$4 sm:$0xff]   ;;  %v631_v6 = vld [vmem:[%s750_s0 + $0x4] sm:$0xf]  ;;  %v34_v7 = vshrl.u32 %v15_v4, 16  ;;  %v37_v8 = vshll.u32 %v15_v4, 16  ;;  %515 = vmatprep.subr.bf16.mxu1 %v573_v3  ;;  %vm672_vm6 = vmor %vm30_vm1, %vm31_vm2 }
   0x4   :  { %531 = vmatprep.subr.bf16.mxu0 %v569_v1  ;;  %v465_v10 = vcombine.low %v15_v4, %v631_v6  ;;  %516 = vmatpush3.bf16.msra.mxu1 %v573_v3  ;;  %v576_v13 = vld [vmem:[%s749_s1 + $0x2c] sm:$0xff]   ;;  %v228_v15 = vsel %vm131_vm3, %v572_v5, 0  ;;  %v47_v16 = vshrl.u32 %v631_v6, 16  ;;  %v290_v19 = vrot.slane %v631_v6, 5  ;;  %v579_v20 = vld [vmem:[%s749_s1 + $0x34] sm:$0xff]   ;;  %v581_v25 = vld [vmem:[%s749_s1 + $0x3c] sm:$0xff]  }
   0x5   :  { %v36_v11 = vrot.slane %v34_v7, 4  ;;  %v39_v12 = vrot.slane %v37_v8, 5  ;;  %v17_v14 = vld [vmem:[%s750_s0 + $0xc] sm:$0xf]  ;;  %517 = vmatprep.subr.bf16.mxu1 %v576_v13  ;;  %v653_v24 = vld [vmem:[%s750_s0 + $0x10] sm:$0xf]  ;;  %vm686_vm7 = vmor %vm285_vm4, %vm286_vm5 }
   0x6   :  { %539 = vmatprep.mubr.msk.bf16.mxu0 %vm124_vm0, %v465_v10  ;;  %v58_v17 = vshrl.u32 %v17_v14, 16  ;;  %v61_v18 = vshll.u32 %v17_v14, 16  ;;  %v43_v26 = vshll.u32 %v631_v6, 16  ;;  %v71_v27 = vshrl.u32 %v653_v24, 16  ;;  %v575_v31 = vld [vmem:[%s749_s1 + $0x48] sm:$0xff]   ;;  %v578_v49 = vld [vmem:[%s749_s1 + $0x50] sm:$0xff]  }
   0x7   :  { %532 = vmatpush3.bf16.msra.mxu0 %v569_v1  ;;  %v40_v23 = vor.u32 %v39_v12, %v36_v11  ;;  %v49_v28 = vrot.slane %v47_v16, 4  ;;  %v292_v30 = vrot.slane %v290_v19, 4  ;;  %v28_v32 = vld [vmem:[%s750_s0 + $0x8] sm:$0x1]  ;;  %v583_v35 = vld [vmem:[%s749_s1 + $0x44] ss:$0 sps:$4 sm:$0xff]   ;;  %v466_v39 = vcombine.low %v17_v14, %v653_v24 }
   0x8   :  { %533 = vmatprep.subr.bf16.mxu0 %v570_v2  ;;  %v60_v21 = vrot.slane %v58_v17, 4  ;;  %v63_v22 = vrot.slane %v61_v18, 5  ;;  %518 = vmatpush3.bf16.msra.mxu1 %v576_v13  ;;  %v45_v34 = vrot.slane %v43_v26, 5  ;;  %v53_v37 = vshll.u32 %v28_v32, 16  ;;  %v29_v41 = vld [vmem:[%s750_s0 + $0x14] sm:$0x1] }
   0x9   :  { %519 = vmatprep.subr.bf16.mxu1 %v579_v20  ;;  %v41_v33 = vrot.slane %v40_v23, 4  ;;  %v293_v38 = vrot.slane %v28_v32, 5  ;;  %v67_v42 = vshll.u32 %v653_v24, 16  ;;  %v279_v43 = vld [vmem:[%s750_s0] sm:$0xe]  ;;  %v73_v47 = vrot.slane %v71_v27, 4 }
   0xa   :  { %v64_v29 = vor.u32 %v63_v22, %v60_v21  ;;  %v50_v40 = vor.u32 %v49_v28, %v45_v34  ;;  %v55_v45 = vrot.slane %v53_v37, 5  ;;  %v77_v48 = vshll.u32 %v29_v41, 16  ;;  %v580_v62 = vld [vmem:[%s749_s1 + $0x58] sm:$0xff]   ;;  %v582_v4 = vld [vmem:[%s749_s1 + $0x60] sm:$0xff]  }
   0xb   :  { %534 = vmatpush3.bf16.msra.mxu0 %v570_v2  ;;  %v46_v50 = vsel %vm672_vm6, %v41_v33, %v45_v34  ;;  %v69_v52 = vrot.slane %v67_v42, 5  ;;  %v474_v53 = vrot.slane %v279_v43, 9  ;;  %v133_v54 = vsel %vm131_vm3, %v583_v35, 0 }
   0xc   :  { %535 = vmatprep.subr.bf16.mxu0 %v571_v9  ;;  %520 = vmatpush3.bf16.msra.mxu1 %v579_v20  ;;  %v65_v46 = vrot.slane %v64_v29, 4  ;;  %v51_v51 = vrot.slane %v50_v40, 4  ;;  %v294_v55 = vsel %vm686_vm7, %v292_v30, %v293_v38  ;;  %v79_v58 = vrot.slane %v77_v48, 5 }
   0xd   :  { %521 = vmatprep.subr.bf16.mxu1 %v581_v25  ;;  %v74_v57 = vor.u32 %v73_v47, %v69_v52  ;;  %v291_v59 = vsel %vm686_vm7, %v474_v53, %v290_v19  ;;  %v297_v2 = vrot.slane %v653_v24, 5  ;;  %v300_v6 = vrot.slane %v29_v41, 5 }
   0xe   :  { %v56_v56 = vsel %vm672_vm6, %v51_v51, %v55_v45  ;;  %v485_v61 = vcombine.low %v291_v59, %v294_v55  ;;  %v70_v63 = vsel %vm672_vm6, %v65_v46, %v69_v52 }
   0xf   :  { %536 = vmatpush3.bf16.msra.mxu0 %v571_v9  ;;  %v456_v60 = vcombine.low %v46_v50, %v56_v56  ;;  %v75_v0 = vrot.slane %v74_v57, 4  ;;  %v299_v8 = vrot.slane %v297_v2, 4  ;;  %v584_v9 = vld [vmem:[%s749_s1 + $0x68] ss:$0 sps:$4 sm:$0xff]  }
  0x10   :  { %566 = vmatprep.subr.msk.bf16.mxu0 %vm131_vm3, %v572_v5  ;;  %522 = vmatpush3.bf16.msra.mxu1 %v581_v25  ;;  %v280_v5 = vld [vmem:[%s750_s0 + $0xc] sm:$0xe]  ;;  %v352_v12 = vsel %vm131_vm3, %v584_v9, 0 }
  0x11   :  { %565 = vmatprep.subr.msk.bf16.mxu1 %vm131_vm3, %v583_v35  ;;  %525 = vmatprep.mubr.msk.bf16.mxu1 %vm124_vm0, %v456_v60  ;;  %v80_v1 = vsel %vm672_vm6, %v75_v0, %v79_v58  ;;  %v475_v7 = vrot.slane %v280_v5, 9  ;;  %v301_v11 = vsel %vm686_vm7, %v299_v8, %v300_v6 }
  0x12   :  { %v457_v3 = vcombine.low %v70_v63, %v80_v1 }
  0x13   :  { %538 = vmatpush3.bf16.msra.mxu0 %v228_v15  ;;  %v298_v10 = vsel %vm686_vm7, %v475_v7, %v297_v2 }
  0x14   :  { %543 = vmatprep.subr.bf16.mxu0 %v575_v31  ;;  %524 = vmatpush3.bf16.msra.mxu1 %v133_v54  ;;  %v486_v13 = vcombine.low %v298_v10, %v301_v11 }
  0x16   :  { %540 = vmatmul.mubr.msk.bf16.vlgmr.msra.gmra.mrb[0].mxu0 %vm124_vm0, %v466_v39 }
  0x17   :  { %544 = vmatpush3.bf16.msra.mxu0 %v575_v31  ;;  %553 = vmatprep.mubr.msk.bf16.mxu0 %vm124_vm0, %v485_v61 }
  0x18   :  { %545 = vmatprep.subr.bf16.mxu0 %v578_v49  ;;  %526 = vmatmul.mubr.msk.bf16.vlgmr.msra.gmra.mrb[0].mxu1 %vm124_vm0, %v457_v3 }
  0x1b   :  { %546 = vmatpush3.bf16.msra.mxu0 %v578_v49 }
  0x1c   :  { %547 = vmatprep.subr.bf16.mxu0 %v580_v62 }
  0x1f   :  { %548 = vmatpush3.bf16.msra.mxu0 %v580_v62 }
  0x20   :  { %549 = vmatprep.subr.bf16.mxu0 %v582_v4 }
  0x23   :  { %550 = vmatpush3.bf16.msra.mxu0 %v582_v4 }
  0x24   :  { %567 = vmatprep.subr.msk.bf16.mxu0 %vm131_vm3, %v584_v9 }
  0x27   :  { %552 = vmatpush3.bf16.msra.mxu0 %v352_v12 }
  0x2a   :  { %554 = vmatmul.mubr.msk.bf16.vlgmr.msra.gmra.mrb[0].mxu0 %vm124_vm0, %v486_v13 }
  0xeb   :  { %v527_v14 = vpop.f32.mrb[0].mxu1 }
  0xec   :  { %v169_v15 = vpop.f32.mrb[1].mxu1 }
  0xed   :  { %v528_v16 = vpop.f32.mrb[2].mxu1 }
  0xee   :  { %v172_v17 = vpop.f32.mrb[3].mxu1 }
  0xfd   :  { %v555_v18 = vpop.f32.mrb[0].mxu0 }
  0xfe   :  { %v557_v19 = vadd.f32 %v555_v18, %v527_v14  ;;  %v388_v20 = vpop.f32.mrb[1].mxu0 }
  0xff   :  { %v558_v21 = vadd.f32 %v388_v20, %v169_v15  ;;  %v556_v22 = vpop.f32.mrb[2].mxu0 }
 0x100   :  { %409 = vst [vmem:[%s751_s2 + $0x10] sm:$0xff] %v557_v19  ;;  %v559_v23 = vadd.f32 %v556_v22, %v528_v16  ;;  %v391_v24 = vpop.f32.mrb[3].mxu0  ;;  %v423_v29 = vmul.f32 %v557_v19, %v557_v19 }
 0x101   :  { %407 = vst [vmem:[%s751_s2] sm:$0xff] %v558_v21  ;;  %v560_v25 = vadd.f32 %v391_v24, %v172_v17  ;;  %v421_v26 = vmul.f32 %v558_v21, %v558_v21 }
 0x102   :  { %410 = vst [vmem:[%s751_s2 + $0x18] sm:$0xff] %v559_v23  ;;  %v424_v32 = vmul.f32 %v559_v23, %v559_v23 }
 0x103   :  { %408 = vst [vmem:[%s751_s2 + $0x8] sm:$0xff] %v560_v25  ;;  %v411_v27 = vadd.f32 %v560_v25, %v558_v21  ;;  %v422_v28 = vmul.f32 %v560_v25, %v560_v25 }
 0x105   :  { %v412_v30 = vadd.f32 %v557_v19, %v411_v27  ;;  %v425_v31 = vadd.f32 %v422_v28, %v421_v26 }
 0x107   :  { %v413_v33 = vadd.f32 %v559_v23, %v412_v30  ;;  %v426_v34 = vadd.f32 %v425_v31, %v423_v29 }
 0x109   :  { %v414_v35 = vrot.slane %v413_v33, 4  ;;  %v427_v36 = vadd.f32 %v426_v34, %v424_v32 }
 0x10b   :  { %v415_v37 = vadd.f32 %v414_v35, %v413_v33  ;;  %v428_v38 = vrot.slane %v427_v36, 4 }
 0x10d   :  { %v416_v39 = vrot.slane %v415_v37, 2  ;;  %v429_v40 = vadd.f32 %v428_v38, %v427_v36 }
 0x10f   :  { %v417_v41 = vadd.f32 %v416_v39, %v415_v37  ;;  %v430_v42 = vrot.slane %v429_v40, 2 }
 0x111   :  { %v418_v43 = vrot.slane %v417_v41, 1  ;;  %v431_v44 = vadd.f32 %v430_v42, %v429_v40 }
 0x113   :  { %v419_v45 = vadd.f32 %v418_v43, %v417_v41  ;;  %v432_v46 = vrot.slane %v431_v44, 1 }
 0x115   :  { %420 = vst [vmem:[%s752_s3] sm:$0x1] %v419_v45  ;;  %v433_v47 = vadd.f32 %v432_v46, %v431_v44 }
 0x117   :  { %434 = vst [vmem:[%s753_s4] sm:$0x1] %v433_v47 }

</bundles_post_ra>
